<compile_context>
chip_gen: v7x
topology: tpu7x:2x2x1
jax: 0.10.0
libtpu: 0.0.40
codegen_flags: <defaults>
</compile_context>

<pallas_src>
import functools

import jax
import jax.numpy as jnp
from jax.experimental import pallas as pl
from jax.experimental.pallas import tpu as pltpu


def _layernorm_kernel(x_ref, alpha_ref, bias_ref, o_ref, *, eps, inv_nm1):
    x = x_ref[...].astype(jnp.float32)                       # (block_rows, F)
    mean = jnp.mean(x, axis=-1, keepdims=True)
    diff = x - mean
    # PyTorch torch.std() default: unbiased estimator (divide by N-1).
    var = jnp.sum(diff * diff, axis=-1, keepdims=True) * jnp.float32(inv_nm1)
    denom = jnp.sqrt(var) + jnp.float32(eps)
    inv = pl.reciprocal(denom, approx=True)                  # EUP slot
    inv = inv * (jnp.float32(2.0) - denom * inv)             # one Newton step
    y = (alpha_ref[...].astype(jnp.float32) * (diff * inv)
         + bias_ref[...].astype(jnp.float32))
    o_ref[...] = y.astype(o_ref.dtype)


def _pick_block_rows(rows, features, itemsize, *,
                     max_block_rows=1024, vmem_budget_bytes=12 << 20):
    """Largest row tile that (a) respects sublane packing, (b) keeps the
    double-buffered in+out footprint inside a VMEM budget that is safe on
    v5e/v6e/v7x, and (c) leaves >=2 grid steps for megacore sharding."""
    # sublane packing: 8 rows for 4-byte dtypes, 16 for bf16, 32 for int8
    pack = 8 * max(1, 4 // max(1, itemsize))
    per_row_bytes = features * itemsize
    # in tile + out tile, each double-buffered by the pipeline -> 4 copies
    budget_rows = max(pack, vmem_budget_bytes // (4 * per_row_bytes))
    br = min(max_block_rows, budget_rows)
    br = max(pack, (br // pack) * pack)
    rows_up = ((rows + pack - 1) // pack) * pack
    br = min(br, rows_up)
    # keep at least 2 grid steps when the problem allows (v7x has 2 TCs)
    if rows_up > pack and pl.cdiv(rows_up, br) < 2:
        half = ((rows_up + 1) // 2 + pack - 1) // pack * pack
        br = max(pack, min(br, half))
    return br


def layer_norm_pallas(x, alpha, bias, eps=1e-6, block_rows=None):
    """LayerNormalization over the last axis of x (any leading shape)."""
    orig_shape = x.shape
    features = orig_shape[-1]
    rows = 1
    for d in orig_shape[:-1]:
        rows *= int(d)

    x2 = x.reshape(rows, features)
    alpha2 = alpha.reshape(1, features)
    bias2 = bias.reshape(1, features)

    itemsize = jnp.dtype(x.dtype).itemsize
    if block_rows is None:
        block_rows = _pick_block_rows(rows, features, itemsize)

    grid = (pl.cdiv(rows, block_rows),)   # partial tail block handled by Pallas

    kernel = functools.partial(
        _layernorm_kernel,
        eps=eps,
        inv_nm1=1.0 / max(features - 1, 1),   # guard degenerate features==1
    )

    out = pl.pallas_call(
        kernel,
        out_shape=jax.ShapeDtypeStruct((rows, features), x.dtype),
        grid_spec=pl.GridSpec(
            grid=grid,
            in_specs=[
                pl.BlockSpec((block_rows, features), lambda i: (i, 0)),
                pl.BlockSpec((1, features), lambda i: (0, 0)),
                pl.BlockSpec((1, features), lambda i: (0, 0)),
            ],
            out_specs=pl.BlockSpec((block_rows, features), lambda i: (i, 0)),
        ),
        compiler_params=pltpu.CompilerParams(
            dimension_semantics=("parallel",),
            vmem_limit_bytes=32 * 1024 * 1024,
        ),
    )(x2, alpha2, bias2)

    return out.reshape(orig_shape)


class Encoder:
    """JAX/Pallas port of the PyTorch Encoder module."""

    def __init__(self, features, layers=()):
        self.layers = list(layers)          # list of callables (x, mask) -> x
        # Matches nn.Parameter(torch.ones(features)) / torch.zeros(features)
        self.alpha = jnp.ones((features,), dtype=jnp.float32)
        self.bias = jnp.zeros((features,), dtype=jnp.float32)
        self.eps = 1e-6

    def __call__(self, x, mask):
        for layer in self.layers:
            x = layer(x, mask)
        return layer_norm_pallas(x, self.alpha, self.bias, eps=self.eps)


if __name__ == "__main__":
    key = jax.random.PRNGKey(0)
    batch, seq, features = 2, 8, 32
    kx, km = jax.random.split(key)
    x = jax.random.normal(kx, (batch, seq, features), dtype=jnp.float32)
    mask = jnp.ones((batch, 1, 1, seq), dtype=jnp.float32)  # unused (no sub-layers)

    enc = Encoder(features, layers=())
    out = enc(x, mask)
    out = jax.block_until_ready(out)

    # Reference in plain JAX (PyTorch semantics: unbiased std, eps added to std)
    mean = jnp.mean(x, axis=-1, keepdims=True)
    std = jnp.sqrt(jnp.sum((x - mean) ** 2, axis=-1, keepdims=True) / (features - 1))
    ref = enc.alpha * ((x - mean) / (std + enc.eps)) + enc.bias
    assert out.shape == x.shape
    assert jnp.max(jnp.abs(out - ref)) < 1e-4

    print("KERNEL_OK")
</pallas_src>

<mosaic_0001>
module attributes {stable_mosaic.version = 11 : i64} {
  func.func @_layernorm_kernel(%arg0: i32, %arg1: memref<8x32xf32, #tpu.memory_space<vmem>>, %arg2: memref<1x32xf32, #tpu.memory_space<vmem>>, %arg3: memref<1x32xf32, #tpu.memory_space<vmem>>, %arg4: memref<8x32xf32, #tpu.memory_space<vmem>>) attributes {dimension_semantics = [#tpu.dimension_semantics<parallel>], iteration_bounds = array<i64: 2>, scalar_prefetch = 0 : i64, scratch_operands = 0 : i64, tpu.core_type = #tpu.core_type<tc>, window_params = [{transform_indices = @transform_0, window_bounds = array<i64: 8, 32>}, {pipeline_mode = #tpu.pipeline_mode<synchronous>, transform_indices = @transform_1, window_bounds = array<i64: 1, 32>}, {pipeline_mode = #tpu.pipeline_mode<synchronous>, transform_indices = @transform_2, window_bounds = array<i64: 1, 32>}, {transform_indices = @transform_3, window_bounds = array<i64: 8, 32>}]} {
    %c0 = arith.constant 0 : index
    %c0_0 = arith.constant 0 : index
    %0 = vector.load %arg1[%c0, %c0_0] : memref<8x32xf32, #tpu.memory_space<vmem>>, vector<8x32xf32>
    %cst = arith.constant dense<0.000000e+00> : vector<8xf32>
    %1 = vector.multi_reduction <add>, %0, %cst [1] : vector<8x32xf32> to vector<8xf32>
    %2 = vector.shape_cast %1 : vector<8xf32> to vector<8x1xf32>
    %cst_1 = arith.constant 3.200000e+01 : f32
    %3 = vector.broadcast %cst_1 : f32 to vector<8x1xf32>
    %4 = arith.divf %2, %3 : vector<8x1xf32>
    %5 = vector.broadcast %4 : vector<8x1xf32> to vector<8x32xf32>
    %6 = arith.subf %0, %5 : vector<8x32xf32>
    %7 = arith.mulf %6, %6 : vector<8x32xf32>
    %cst_2 = arith.constant dense<0.000000e+00> : vector<8xf32>
    %8 = vector.multi_reduction <add>, %7, %cst_2 [1] : vector<8x32xf32> to vector<8xf32>
    %9 = vector.shape_cast %8 : vector<8xf32> to vector<8x1xf32>
    %cst_3 = arith.constant 0.0322580636 : f32
    %10 = vector.broadcast %cst_3 : f32 to vector<8x1xf32>
    %11 = arith.mulf %9, %10 : vector<8x1xf32>
    %12 = math.sqrt %11 : vector<8x1xf32>
    %cst_4 = arith.constant 9.99999997E-7 : f32
    %13 = vector.broadcast %cst_4 : f32 to vector<8x1xf32>
    %14 = arith.addf %12, %13 : vector<8x1xf32>
    %15 = tpu.reciprocal %14 {approx = true} : vector<8x1xf32> -> vector<8x1xf32>
    %16 = arith.mulf %14, %15 : vector<8x1xf32>
    %cst_5 = arith.constant 2.000000e+00 : f32
    %17 = vector.broadcast %cst_5 : f32 to vector<8x1xf32>
    %18 = arith.subf %17, %16 : vector<8x1xf32>
    %19 = arith.mulf %15, %18 : vector<8x1xf32>
    %c0_6 = arith.constant 0 : index
    %c0_7 = arith.constant 0 : index
    %20 = vector.load %arg2[%c0_6, %c0_7] : memref<1x32xf32, #tpu.memory_space<vmem>>, vector<1x32xf32>
    %21 = vector.broadcast %19 : vector<8x1xf32> to vector<8x32xf32>
    %22 = arith.mulf %6, %21 : vector<8x32xf32>
    %23 = vector.broadcast %20 : vector<1x32xf32> to vector<8x32xf32>
    %24 = arith.mulf %23, %22 : vector<8x32xf32>
    %c0_8 = arith.constant 0 : index
    %c0_9 = arith.constant 0 : index
    %25 = vector.load %arg3[%c0_8, %c0_9] : memref<1x32xf32, #tpu.memory_space<vmem>>, vector<1x32xf32>
    %26 = vector.broadcast %25 : vector<1x32xf32> to vector<8x32xf32>
    %27 = arith.addf %24, %26 : vector<8x32xf32>
    %c0_10 = arith.constant 0 : index
    %c0_11 = arith.constant 0 : index
    %28 = vector.load %arg4[%c0_10, %c0_11] : memref<8x32xf32, #tpu.memory_space<vmem>>, vector<8x32xf32>
    tpu.vector_store %arg4[%c0_10, %c0_11], %27 {strides = array<i32>} : memref<8x32xf32, #tpu.memory_space<vmem>>, vector<8x32xf32>,
    return
  }
  func.func @transform_0(%arg0: i32) -> (i32, i32) {
    %c0_i32 = arith.constant 0 : i32
    %c0_i32_0 = arith.constant 0 : i32
    return %arg0, %c0_i32 : i32, i32
  }
  func.func @transform_1(%arg0: i32) -> (i32, i32) {
    %c0_i32 = arith.constant 0 : i32
    %c0_i32_0 = arith.constant 0 : i32
    %c0_i32_1 = arith.constant 0 : i32
    return %c0_i32, %c0_i32_0 : i32, i32
  }
  func.func @transform_2(%arg0: i32) -> (i32, i32) {
    %c0_i32 = arith.constant 0 : i32
    %c0_i32_0 = arith.constant 0 : i32
    %c0_i32_1 = arith.constant 0 : i32
    return %c0_i32, %c0_i32_0 : i32, i32
  }
  func.func @transform_3(%arg0: i32) -> (i32, i32) {
    %c0_i32 = arith.constant 0 : i32
    %c0_i32_0 = arith.constant 0 : i32
    return %arg0, %c0_i32 : i32, i32
  }
}

</mosaic_0001>

<bundles_post_ra>
// kernel: tpu_custom_call.1
= control target key start
LH: loop header
LB: loop body
LE: loop exit
PB: predicated region body
PF: predicated region fallthrough
CT: control target
= control target key end

     0   :  { %8 = vsyncpa [#allocation3], 0  ;;  %s671_s0 = inlined_call_operand.hbm [shape: f32[16,32], index: 0, kind: input, shape index: {}]   ;;  %s672_s1 = inlined_call_operand.vmem [shape: f32[1,32], index: 1, kind: input, shape index: {}]   ;;  %s673_s2 = inlined_call_operand.vmem [shape: f32[1,32], index: 2, kind: input, shape index: {}]   ;;  %s674_s3 = inlined_call_operand.hbm [shape: f32[16,32], index: 3, kind: output, shape index: {}]  }
   0x1   :  { %10 = vsyncpa [#allocation3 + $0x1], 0 }
   0x2   :  { %11 = vsyncpa [#allocation4], 0 }
   0x3   :  { %13 = vsyncpa [#allocation4 + $0x1], 0  ;;  %s497_s12 = smov 0   ;;  %s499_s13 = smov 0  }
   0x4   :  { %s501_s14 = smov 0   ;;  %s503_s15 = smov 0  }
   0x5 LB: > { %s518_s16 = sadd.s32 4294967295, %s473_s15   ;;  %s313_s17 = sadd.s32 4294967294, %s473_s15   ;;  %s473_s15 = sphi %s503_s15, %s689_s15   ;;  %s469_s14 = sphi %s501_s14, %s688_s14   ;;  %s465_s13 = sphi %s499_s13, %s687_s13   ;;  %s461_s12 = sphi %s497_s12, %s686_s12  }
   0x6   : > { %s522_s18 = sadd.s32 1, %s473_s15   ;;  %s26_s19 = sadd.s32 1, %s469_s14 }
   0x7   : > { %s23_s20 = ssub.s32 %s473_s15, %s522_s18  ;;  %p33_p0 = scmp.ne.s32.totalorder %s469_s14, %s465_s13 }
   0x8   : > { %p24_p1 = scmp.eq.s32.totalorder %s23_s20, 0  ;;  %p34_p2 = scmp.eq.s32.totalorder %s473_s15, 0 }
   0x9   : > { %p39_p3 = scmp.ne.s32.totalorder %s465_s13, %s461_s12  ;;  %p40_p4 = scmp.eq.s32.totalorder %s518_s16, 0 }
   0xa   : > { %s534_s21 = scalar_select %p24_p1, %s469_s14, %s26_s19  }
   0xb   : > { %p536_p5 = por %p34_p2, %p33_p0  ;;  %p540_p6 = por %p40_p4, %p39_p3 }
   0xc   : > { %p105_p7 = scmp.eq.s32.totalorder %s518_s16, 1  ;;  %p111_p8 = scmp.eq.s32.totalorder %s313_s17, 1 }
   0xd   : > { %p339_p10 = scmp.lt.s32.totalorder %s473_s15, 2  ;;  %s137_s26 = sand.u32 1, %s469_s14  }
   0xe   : > { %p547_p11 = por %p105_p7, %p33_p0  ;;  %p551_p12 = por %p111_p8, %p39_p3 }
   0xf   : > { %s317_s27 = sshll.u32 %s473_s15, 7  ;;  %s316_s28 = sshll.u32 %s137_s26, 3 }
  0x10   : > { %s678_s24 = scalar_select %p547_p11, 1, 0 }
  0x11   : > { %s679_s25 = scalar_select %p551_p12, 1, 0 }
  0x12   : > { %s560_s4 = scalar_lea.hbm %s671_s0, %s317_s27  ;;  %s141_s5 = scalar_lea.vmem [#allocation2], %s316_s28 }
  0x13   : > { %s148_s6 = sshll.u32 %s141_s5, 4  ;;  %p564_p13 = pnand %p339_p10, %p536_p5  ;;  %s568_s6 = int_to_ptr.vmem [resolvable:$true] %s148_s6 }
  0x14   : > { %s138_s8 = scalar_lea.sflag [#allocation3], %s137_s26  ;;  %s377_s9 = scalar_lea.hbm %s560_s4, 128 }
  0x15   : > { %p378_p2 = scmp.ne.s32.totalorder %s560_s4, %s377_s9  ;;  %p379_p3 = pneg %p564_p13 }
  0x16   : > { %s382_s17 = scalar_lea.hbm %s671_s0, 256  ;;  %p383_p5 = scmp.lt.u32.totalorder %s560_s4, %s671_s0 }
  0x17   : > { %p380_p4 = pnand %p379_p3, %p378_p2  ;;  %p384_p8 = scmp.lt.u32.totalorder %s382_s17, %s377_s9 }
  0x18   : > { %p386_p9 = scmp.lt.u32.totalorder %s377_s9, %s560_s4 }
  0x19   : > { %p381_p7 = pneg %p380_p4  ;;  %p385_p10 = por %p384_p8, %p383_p5 }
  0x1b   : > { %p387_p0 = por %p386_p9, %p385_p10 }
  0x1d   : > { %p388_p1 = pnand %p387_p0, %p381_p7 }
  0x1f   : > { %391 = shalt.err (!%p388_p1)
}
  0x20   : > { %s392_s22 = scalar_lea.vmem %s568_s6, 128  ;;  %s475_s26 = smov [#allocation2]  }
  0x21   : > { %p393_p2 = scmp.ne.s32.totalorder %s568_s6, %s392_s22  ;;  %s397_s27 = sshll.u32 %s475_s26, 4  ;;  %s398_s27 = int_to_ptr.vmem [resolvable:$false] %s397_s27 }
  0x22   : > { %s399_s28 = scalar_lea.vmem %s398_s27, 256  ;;  %p400_p11 = scmp.lt.s32.totalorder %s568_s6, %s398_s27 }
  0x23   : > { %p395_p4 = pnand %p393_p2, %p379_p3  ;;  %p401_p5 = scmp.lt.s32.totalorder %s399_s28, %s392_s22 }
  0x25   : > { %p396_p12 = pneg %p395_p4  ;;  %p402_p8 = por %p401_p5, %p400_p11 }
  0x27   : > { %p403_p9 = pnand %p402_p8, %p396_p12 }
  0x29   : > { %406 = shalt.err (!%p403_p9)
}
  0x2a   : > { %334 = dma.hbm_to_vmem [thread:$0]  (!%p564_p13), %s560_s4, 128, %s568_s6, %s138_s8  }
  0x2b   : > { %p681_p0 = scmp.lt.s32.totalorder %s473_s15, 3  ;;  %p682_p1 = scmp.ge.s32.totalorder %s473_s15, 1 }
  0x2d   : > { %p154_p3 = pnand %p682_p1, %p681_p0 }
  0x2e   : > { %s602_s29 = sand.u32 (!%p154_p3), 1, %s465_s13  }
  0x2f   : > { %157 = sbr.rel (%p154_p3) target bundleno = 404 (0x194), region = 32  ;;  %s319_s30 = sshll.u32 (!%p154_p3), %s602_s29, 3 }
  0x30   : > { %s160_s5 = scalar_lea.sflag (!%p154_p3), [#allocation3], %s602_s29  ;;  %s163_s7 = scalar_lea.vmem (!%p154_p3), [#allocation2], %s319_s30 }
  0x36   : > { %452 = dma.done.wait (%p540_p6), %s160_s5, 128  }
  0x37   : > { %454 = vsyncadd (%p540_p6), %s160_s5, 4294967168  ;;  %vm187_vm0 = vcmask 261120   ;;  %v186_v0 = vld [vmem:[%s163_s7] sm:$0xff]  ;;  %s324_s9 = sshll.u32 %s518_s16, 7  ;;  %s185_s10 = scalar_lea.vmem [#allocation5], %s319_s30 }
  0x38   : > { %v188_v1 = vsel %vm187_vm0, %v186_v0, 0.0  ;;  %v321_v19 = vld [vmem:[%s672_s1] ss:$0 sm:$0xff]  ;;  %s243_s11 = sshll.u32 %s185_s10, 4  ;;  %s626_s20 = scalar_lea.hbm %s674_s3, %s324_s9  ;;  %s628_s11 = int_to_ptr.vmem [resolvable:$true] %s243_s11 }
  0x39   : > { %189 = vadd.xlane.f32.xlu0 %v188_v1  ;;  %v322_v21 = vld [vmem:[%s673_s2] ss:$0 sm:$0xff]  ;;  %s230_s22 = scalar_lea.sflag [#allocation4], %s602_s29  ;;  %s407_s26 = scalar_lea.vmem %s628_s11, 128 }
  0x3a   : > { %p408_p6 = scmp.ne.s32.totalorder %s628_s11, %s407_s26  ;;  %p683_p11 = scmp.ne.s32.totalorder %s678_s24, 0 }
  0x3b   : > { %s476_s16 = smov [#allocation5]  }
  0x3c   : > { %p409_p12 = pnand %p408_p6, %p683_p11  ;;  %s411_s27 = sshll.u32 %s476_s16, 4  ;;  %s412_s27 = int_to_ptr.vmem [resolvable:$false] %s411_s27 }
  0x3d   : > { %s413_s28 = scalar_lea.vmem %s412_s27, 256  ;;  %p414_p7 = scmp.lt.s32.totalorder %s628_s11, %s412_s27 }
  0x3e   : > { %p410_p13 = pneg %p409_p12  ;;  %p415_p10 = scmp.lt.s32.totalorder %s413_s28, %s407_s26 }
  0x40   : > { %p416_p2 = por %p415_p10, %p414_p7 }
  0x42   : > { %p417_p4 = pnand %p416_p2, %p410_p13 }
  0xc6   : > { %v190_v2 = vpop.xlane.xlu0 %189 }
  0xc7   : > { %v192_v3 = vmul.f32 0.03125, %v190_v2 }
  0xc9   : > { %v193_v4 = vsub.f32 %v186_v0, %v192_v3 }
  0xcb   : > { %v194_v5 = vmul.f32 %v193_v4, %v193_v4 }
  0xcd   : > { %v195_v6 = vsel %vm187_vm0, %v194_v5, 0.0 }
  0xce   : > { %196 = vadd.xlane.f32.xlu0 %v195_v6 }
 0x15b   : > { %v197_v7 = vpop.xlane.xlu0 %196 }
 0x15c   : > { %v198_v8 = vmul.f32 0.032258064, %v197_v7 }
 0x15e   : > { %373 = vrsqrt.f32 %v198_v8  ;;  %vm201_vm1 = vcmp.eq.f32.partialorder %v198_v8, inf  ;;  %v204_v11 = vand.u32 2147483648, %v198_v8  ;;  %vm203_vm2 = vcmp.eq.f32.partialorder %v198_v8, 0.0 }
 0x168   : > { %v374_v9 = vpop.eup %373 }
 0x169   : > { %v200_v10 = vmul.f32 %v374_v9, %v198_v8 }
 0x16b   : > { %v202_v12 = vsel %vm201_vm1, %v198_v8, %v200_v10 }
 0x16c   : > { %v205_v13 = vsel %vm203_vm2, %v204_v11, %v202_v12 }
 0x16d   : > { %v206_v14 = vadd.f32 1e-06, %v205_v13 }
 0x16f   : > { %375 = vrcp.f32 %v206_v14 }
 0x179   : > { %v376_v15 = vpop.eup %375 }
 0x17a   : > { %v208_v16 = vmul.f32 %v376_v15, %v206_v14 }
 0x17c   : > { %v209_v17 = vsub.f32 2.0, %v208_v16 }
 0x17e   : > { %v210_v18 = vmul.f32 %v376_v15, %v209_v17 }
 0x180   : > { %v212_v20 = vmul.f32 %v210_v18, %v193_v4 }
 0x182   : > { %v219_v22 = vmul.f32 %v321_v19, %v212_v20 }
 0x184   : > { %v227_v23 = vadd.f32 %v322_v21, %v219_v22 }
 0x186   : > { %228 = vst.msk [vmem:[%s185_s10] sm:$0xff] %vm187_vm0, %v227_v23 }
 0x187   : > { %420 = shalt.err (!%p417_p4)
}
 0x188   : > { %s421_s29 = scalar_lea.hbm %s626_s20, 128  ;;  %s425_s7 = scalar_lea.hbm %s674_s3, 256 }
 0x189   : > { %p422_p5 = scmp.ne.s32.totalorder %s626_s20, %s421_s29  ;;  %p426_p0 = scmp.lt.u32.totalorder %s626_s20, %s674_s3 }
 0x18a   : > { %p427_p1 = scmp.lt.u32.totalorder %s425_s7, %s421_s29  ;;  %p429_p6 = scmp.lt.u32.totalorder %s421_s29, %s626_s20 }
 0x18b   : > { %p423_p8 = pnand %p422_p5, %p683_p11 }
 0x18c   : > { %p428_p3 = por %p427_p1, %p426_p0 }
 0x18d   : > { %p424_p9 = pneg %p423_p8 }
 0x18e   : > { %p430_p12 = por %p429_p6, %p428_p3 }
 0x190   : > { %p431_p13 = pnand %p430_p12, %p424_p9 }
 0x192   : > { %434 = shalt.err (!%p431_p13)
}
 0x193   : > { %329 = dma.vmem_to_hbm [thread:$0]  (%p683_p11), %s628_s11, 128, %s626_s20, %s230_s22  }
 0x194 PF: > { %s255_s6 = sand.u32 1, %s461_s12   ;;  %p684_p7 = scmp.ne.s32.totalorder %s679_s25, 0 }
 0x195   : > { %p685_p10 = scmp.ge.s32.totalorder %s473_s15, 2  ;;  %s256_s8 = scalar_lea.sflag [#allocation4], %s255_s6 }
 0x197   : > { %p336_p2 = pnand %p685_p10, %p684_p7 }
 0x199   : > { %456 = dma.done.wait (!%p336_p2), %s256_s8, 128  }
 0x19a   : > { %458 = vsyncadd (!%p336_p2), %s256_s8, 4294967168  ;;  %p16_p4 = scmp.ge.s32.totalorder %s522_s18, 4   ;;  %s686_s12 = smov %s465_s13 }
 0x19b   : > { %s687_s13 = smov %s469_s14  ;;  %s688_s14 = smov %s534_s21 }
 0x19c   : > { %s689_s15 = smov %s522_s18  ;;  %18 = sbr.rel (!%p16_p4) target bundleno = 5 (0x5), region = 77 }
 0x1a3   :  { %261 = vsyncpa [#allocation3], 1 }
 0x1a4   :  { %263 = vsyncpa [#allocation3 + $0x1], 1 }
 0x1a5   :  { %264 = vsyncpa [#allocation4], 1 }
 0x1a6   :  { %266 = vsyncpa [#allocation4 + $0x1], 1 }

</bundles_post_ra>
